<compile_context>
chip_gen: v6e
topology: v6e:2x2x1
jax: 0.10.0
libtpu: 0.0.40
codegen_flags: <defaults>
</compile_context>

<pallas_src>
import functools

import jax
import jax.numpy as jnp
from jax.experimental import pallas as pl
from jax.experimental.pallas import tpu as pltpu


def _ffn_kernel(x_ref, w1_ref, b1_ref, w2_ref, b2_ref, g_ref, bt_ref, out_ref,
                *, eps, dk):
    # x_ref:     (tm, d_model)
    # w1_ref:    (d_model, d_ff)      b1_ref: (1, d_ff)
    # w2_ref:    (d_ff, d_model)      b2_ref: (1, d_model)
    # g_ref:     (1, d_model)         bt_ref: (1, d_model)
    x = x_ref[...]                       # native dtype, fed straight to the MXU
    d_ff = w1_ref.shape[1]
    tm = x.shape[0]
    d_model = w2_ref.shape[1]

    # linear1 -> relu -> linear2, chunked over d_ff so only a (tm, dk) f32
    # intermediate is live at a time.  MXU accumulates in f32.
    tgt2 = jnp.zeros((tm, d_model), jnp.float32)
    for c in range(0, d_ff, dk):         # static chunks (usually 1 iteration)
        h = jnp.dot(x, w1_ref[:, c:c + dk],
                    preferred_element_type=jnp.float32)
        h = h + b1_ref[:, c:c + dk].astype(jnp.float32)
        h = jnp.maximum(h, 0.0)          # relu (dropout p=0 -> identity)
        tgt2 = tgt2 + jnp.dot(h.astype(w2_ref.dtype), w2_ref[c:c + dk, :],
                              preferred_element_type=jnp.float32)
    tgt2 = tgt2 + b2_ref[...].astype(jnp.float32)

    # residual add + LayerNorm (statistics in f32, matching torch semantics)
    y = x.astype(jnp.float32) + tgt2
    mean = jnp.mean(y, axis=-1, keepdims=True)
    centered = y - mean
    var = jnp.mean(centered * centered, axis=-1, keepdims=True)
    y_norm = centered * jax.lax.rsqrt(var + eps)
    out = y_norm * g_ref[...].astype(jnp.float32) + bt_ref[...].astype(jnp.float32)

    out_ref[...] = out.astype(out_ref.dtype)


def _round_up(x, m):
    return (x + m - 1) // m * m


def ffn_layer_forward(tgt, w1, b1, w2, b2, gamma, beta, *, eps=1e-5,
                      tm=256, dk_max=2048):
    """tgt: (seq, batch, d_model). Returns the same shape."""
    seq, batch, d_model = tgt.shape
    d_ff = w1.shape[1]
    n = seq * batch

    # Row tile: 256 fills the v6e/v7x MXU edge (and is a multiple of v5e's 128).
    # Shrink (8-aligned) when the whole problem is smaller than one tile.
    # Note: on v7x keep n_pad >= 2*tm when possible so both TensorCores get work.
    tm = min(tm, _round_up(n, 8))
    n_pad = _round_up(n, tm)

    # d_ff chunk for the in-kernel loop (bounds the f32 intermediate).
    dk = d_ff if (d_ff <= dk_max or d_ff % dk_max != 0) else dk_max

    x2d = tgt.reshape(n, d_model)
    if n_pad != n:
        x2d = jnp.pad(x2d, ((0, n_pad - n), (0, 0)))

    b1_2d = b1.reshape(1, d_ff)
    b2_2d = b2.reshape(1, d_model)
    gamma_2d = gamma.reshape(1, d_model)
    beta_2d = beta.reshape(1, d_model)

    kernel = functools.partial(_ffn_kernel, eps=eps, dk=dk)

    # Grid-invariant parameters: constant index_map + single buffer (no point
    # double-buffering blocks that never change between grid steps).
    def _param_spec(shape):
        return pl.BlockSpec(shape, lambda i: (0,) * len(shape),
                            pipeline_mode=pl.Buffered(buffer_count=1))

    x_isz = jnp.dtype(tgt.dtype).itemsize
    w_isz = jnp.dtype(w1.dtype).itemsize
    param_bytes = (2 * d_model * d_ff + d_ff + 3 * d_model) * w_isz

    # VMEM budget: single-buffered params + double-buffered in/out tiles +
    # f32 intermediates (h chunk, acc, LN temps); 2x headroom, capped below
    # v7x's 64 MiB physical VMEM.
    vmem_need = (param_bytes
                 + 4 * tm * d_model * x_isz                 # 2x in + 2x out buffers
                 + tm * dk * 4 + 3 * tm * d_model * 4)      # h chunk + f32 temps
    vmem_limit = int(min(max(2 * vmem_need, 16 << 20), 56 << 20))

    cost = pl.CostEstimate(
        flops=4 * n_pad * d_model * d_ff,                   # two matmuls
        transcendentals=n_pad,                              # one rsqrt per row
        bytes_accessed=2 * n_pad * d_model * x_isz + param_bytes)

    out2d = pl.pallas_call(
        kernel,
        out_shape=jax.ShapeDtypeStruct((n_pad, d_model), tgt.dtype),
        grid_spec=pltpu.PrefetchScalarGridSpec(
            num_scalar_prefetch=0,
            grid=(n_pad // tm,),
            in_specs=[
                # token rows tiled over the grid (double-buffered by default)
                pl.BlockSpec((tm, d_model), lambda i: (i, 0)),
                # grid-invariant parameters, single-buffered
                _param_spec((d_model, d_ff)),
                _param_spec((1, d_ff)),
                _param_spec((d_ff, d_model)),
                _param_spec((1, d_model)),
                _param_spec((1, d_model)),
                _param_spec((1, d_model)),
            ],
            out_specs=pl.BlockSpec((tm, d_model), lambda i: (i, 0)),
        ),
        compiler_params=pltpu.CompilerParams(
            dimension_semantics=("parallel",),
            vmem_limit_bytes=vmem_limit),
        cost_estimate=cost,
    )(x2d, w1, b1_2d, w2, b2_2d, gamma_2d, beta_2d)

    if n_pad != n:
        out2d = out2d[:n]
    return out2d.reshape(seq, batch, d_model)


def _xavier_uniform(key, shape, dtype=jnp.float32):
    # matches torch.nn.init.xavier_uniform_ for a 2D weight (fan_in, fan_out)
    fan_in, fan_out = shape
    limit = jnp.sqrt(6.0 / (fan_in + fan_out))
    return jax.random.uniform(key, shape, dtype, minval=-limit, maxval=limit)


def init_ffn_params(key, d_model, dim_feedforward, dtype=jnp.float32):
    k1, k2, k3, k4 = jax.random.split(key, 4)
    # Linear weights stored as (in_features, out_features) (transposed vs torch).
    w1 = _xavier_uniform(k1, (d_model, dim_feedforward), dtype)
    w2 = _xavier_uniform(k2, (dim_feedforward, d_model), dtype)
    # torch default nn.Linear bias init: U(-1/sqrt(fan_in), 1/sqrt(fan_in))
    bound1 = 1.0 / jnp.sqrt(d_model)
    bound2 = 1.0 / jnp.sqrt(dim_feedforward)
    b1 = jax.random.uniform(k3, (dim_feedforward,), dtype, -bound1, bound1)
    b2 = jax.random.uniform(k4, (d_model,), dtype, -bound2, bound2)
    # LayerNorm affine params
    gamma = jnp.ones((d_model,), dtype)
    beta = jnp.zeros((d_model,), dtype)
    return w1, b1, w2, b2, gamma, beta


if __name__ == "__main__":
    # Small, lane-dense demo shapes (real Mask2Former uses d_model=256, d_ff=2048).
    seq, batch, d_model, d_ff = 8, 2, 128, 256

    key = jax.random.PRNGKey(0)
    k_in, k_par = jax.random.split(key)
    tgt = jax.random.normal(k_in, (seq, batch, d_model), jnp.float32)
    params = init_ffn_params(k_par, d_model, d_ff)

    out = jax.block_until_ready(ffn_layer_forward(tgt, *params))

    # correctness check against a pure-JAX reference
    w1, b1, w2, b2, gamma, beta = params
    h = jnp.maximum(tgt @ w1 + b1, 0.0)
    y = tgt + (h @ w2 + b2)
    mean = jnp.mean(y, axis=-1, keepdims=True)
    var = jnp.mean((y - mean) ** 2, axis=-1, keepdims=True)
    ref = (y - mean) / jnp.sqrt(var + 1e-5) * gamma + beta
    assert jnp.allclose(out, ref, atol=1e-4, rtol=1e-4), "mismatch vs reference"

    print("KERNEL_OK")
</pallas_src>

<mosaic_0001>
module attributes {stable_mosaic.version = 11 : i64} {
  func.func @_ffn_kernel(%arg0: i32, %arg1: memref<16x128xf32, #tpu.memory_space<vmem>>, %arg2: memref<128x256xf32, #tpu.memory_space<vmem>>, %arg3: memref<1x256xf32, #tpu.memory_space<vmem>>, %arg4: memref<256x128xf32, #tpu.memory_space<vmem>>, %arg5: memref<1x128xf32, #tpu.memory_space<vmem>>, %arg6: memref<1x128xf32, #tpu.memory_space<vmem>>, %arg7: memref<1x128xf32, #tpu.memory_space<vmem>>, %arg8: memref<16x128xf32, #tpu.memory_space<vmem>>) attributes {dimension_semantics = [#tpu.dimension_semantics<parallel>], iteration_bounds = array<i64: 1>, scalar_prefetch = 0 : i64, scratch_operands = 0 : i64, tpu.core_type = #tpu.core_type<tc>, window_params = [{transform_indices = @transform_0, window_bounds = array<i64: 16, 128>}, {pipeline_mode = #tpu.pipeline_mode<synchronous>, transform_indices = @transform_1, window_bounds = array<i64: 128, 256>}, {pipeline_mode = #tpu.pipeline_mode<synchronous>, transform_indices = @transform_2, window_bounds = array<i64: 1, 256>}, {pipeline_mode = #tpu.pipeline_mode<synchronous>, transform_indices = @transform_3, window_bounds = array<i64: 256, 128>}, {pipeline_mode = #tpu.pipeline_mode<synchronous>, transform_indices = @transform_4, window_bounds = array<i64: 1, 128>}, {pipeline_mode = #tpu.pipeline_mode<synchronous>, transform_indices = @transform_5, window_bounds = array<i64: 1, 128>}, {pipeline_mode = #tpu.pipeline_mode<synchronous>, transform_indices = @transform_6, window_bounds = array<i64: 1, 128>}, {transform_indices = @transform_7, window_bounds = array<i64: 16, 128>}]} {
    %c0 = arith.constant 0 : index
    %c0_0 = arith.constant 0 : index
    %0 = vector.load %arg1[%c0, %c0_0] : memref<16x128xf32, #tpu.memory_space<vmem>>, vector<16x128xf32>
    %cst = arith.constant 0.000000e+00 : f32
    %1 = vector.broadcast %cst : f32 to vector<16x128xf32>
    %c0_1 = arith.constant 0 : index
    %c0_2 = arith.constant 0 : index
    %2 = vector.load %arg2[%c0_1, %c0_2] : memref<128x256xf32, #tpu.memory_space<vmem>>, vector<128x256xf32>
    %cst_3 = arith.constant dense<0.000000e+00> : vector<16x256xf32>
    %3 = tpu.matmul %0, %2, %cst_3 {dimension_numbers = #tpu.dot_dimension_numbers<[1], [0], [0], [1], [0, 0, 1, 1], [], []>} : vector<16x128xf32>, vector<128x256xf32>, vector<16x256xf32> -> vector<16x256xf32>
    %c0_4 = arith.constant 0 : index
    %c0_5 = arith.constant 0 : index
    %4 = vector.load %arg3[%c0_4, %c0_5] : memref<1x256xf32, #tpu.memory_space<vmem>>, vector<1x256xf32>
    %5 = vector.broadcast %4 : vector<1x256xf32> to vector<16x256xf32>
    %6 = arith.addf %3, %5 : vector<16x256xf32>
    %cst_6 = arith.constant 0.000000e+00 : f32
    %7 = vector.broadcast %cst_6 : f32 to vector<16x256xf32>
    %8 = arith.maximumf %6, %7 : vector<16x256xf32>
    %c0_7 = arith.constant 0 : index
    %c0_8 = arith.constant 0 : index
    %9 = vector.load %arg4[%c0_7, %c0_8] : memref<256x128xf32, #tpu.memory_space<vmem>>, vector<256x128xf32>
    %cst_9 = arith.constant dense<0.000000e+00> : vector<16x128xf32>
    %10 = tpu.matmul %8, %9, %cst_9 {dimension_numbers = #tpu.dot_dimension_numbers<[1], [0], [0], [1], [0, 0, 1, 1], [], []>} : vector<16x256xf32>, vector<256x128xf32>, vector<16x128xf32> -> vector<16x128xf32>
    %11 = arith.addf %1, %10 : vector<16x128xf32>
    %c0_10 = arith.constant 0 : index
    %c0_11 = arith.constant 0 : index
    %12 = vector.load %arg5[%c0_10, %c0_11] : memref<1x128xf32, #tpu.memory_space<vmem>>, vector<1x128xf32>
    %13 = vector.broadcast %12 : vector<1x128xf32> to vector<16x128xf32>
    %14 = arith.addf %11, %13 : vector<16x128xf32>
    %15 = arith.addf %0, %14 : vector<16x128xf32>
    %cst_12 = arith.constant dense<0.000000e+00> : vector<16xf32>
    %16 = vector.multi_reduction <add>, %15, %cst_12 [1] : vector<16x128xf32> to vector<16xf32>
    %17 = vector.shape_cast %16 : vector<16xf32> to vector<16x1xf32>
    %cst_13 = arith.constant 1.280000e+02 : f32
    %18 = vector.broadcast %cst_13 : f32 to vector<16x1xf32>
    %19 = arith.divf %17, %18 : vector<16x1xf32>
    %20 = vector.broadcast %19 : vector<16x1xf32> to vector<16x128xf32>
    %21 = arith.subf %15, %20 : vector<16x128xf32>
    %22 = arith.mulf %21, %21 : vector<16x128xf32>
    %cst_14 = arith.constant dense<0.000000e+00> : vector<16xf32>
    %23 = vector.multi_reduction <add>, %22, %cst_14 [1] : vector<16x128xf32> to vector<16xf32>
    %24 = vector.shape_cast %23 : vector<16xf32> to vector<16x1xf32>
    %cst_15 = arith.constant 1.280000e+02 : f32
    %25 = vector.broadcast %cst_15 : f32 to vector<16x1xf32>
    %26 = arith.divf %24, %25 : vector<16x1xf32>
    %cst_16 = arith.constant 9.99999974E-6 : f32
    %27 = vector.broadcast %cst_16 : f32 to vector<16x1xf32>
    %28 = arith.addf %26, %27 : vector<16x1xf32>
    %29 = math.rsqrt %28 : vector<16x1xf32>
    %30 = vector.broadcast %29 : vector<16x1xf32> to vector<16x128xf32>
    %31 = arith.mulf %21, %30 : vector<16x128xf32>
    %c0_17 = arith.constant 0 : index
    %c0_18 = arith.constant 0 : index
    %32 = vector.load %arg6[%c0_17, %c0_18] : memref<1x128xf32, #tpu.memory_space<vmem>>, vector<1x128xf32>
    %33 = vector.broadcast %32 : vector<1x128xf32> to vector<16x128xf32>
    %34 = arith.mulf %31, %33 : vector<16x128xf32>
    %c0_19 = arith.constant 0 : index
    %c0_20 = arith.constant 0 : index
    %35 = vector.load %arg7[%c0_19, %c0_20] : memref<1x128xf32, #tpu.memory_space<vmem>>, vector<1x128xf32>
    %36 = vector.broadcast %35 : vector<1x128xf32> to vector<16x128xf32>
    %37 = arith.addf %34, %36 : vector<16x128xf32>
    %c0_21 = arith.constant 0 : index
    %c0_22 = arith.constant 0 : index
    %38 = vector.load %arg8[%c0_21, %c0_22] : memref<16x128xf32, #tpu.memory_space<vmem>>, vector<16x128xf32>
    tpu.vector_store %arg8[%c0_21, %c0_22], %37 {strides = array<i32>} : memref<16x128xf32, #tpu.memory_space<vmem>>, vector<16x128xf32>,
    return
  }
  func.func @transform_0(%arg0: i32) -> (i32, i32) {
    %c0_i32 = arith.constant 0 : i32
    %c0_i32_0 = arith.constant 0 : i32
    return %arg0, %c0_i32 : i32, i32
  }
  func.func @transform_1(%arg0: i32) -> (i32, i32) {
    %c0_i32 = arith.constant 0 : i32
    %c0_i32_0 = arith.constant 0 : i32
    %c0_i32_1 = arith.constant 0 : i32
    return %c0_i32, %c0_i32_0 : i32, i32
  }
  func.func @transform_2(%arg0: i32) -> (i32, i32) {
    %c0_i32 = arith.constant 0 : i32
    %c0_i32_0 = arith.constant 0 : i32
    %c0_i32_1 = arith.constant 0 : i32
    return %c0_i32, %c0_i32_0 : i32, i32
  }
  func.func @transform_3(%arg0: i32) -> (i32, i32) {
    %c0_i32 = arith.constant 0 : i32
    %c0_i32_0 = arith.constant 0 : i32
    %c0_i32_1 = arith.constant 0 : i32
    return %c0_i32, %c0_i32_0 : i32, i32
  }
  func.func @transform_4(%arg0: i32) -> (i32, i32) {
    %c0_i32 = arith.constant 0 : i32
    %c0_i32_0 = arith.constant 0 : i32
    %c0_i32_1 = arith.constant 0 : i32
    return %c0_i32, %c0_i32_0 : i32, i32
  }
  func.func @transform_5(%arg0: i32) -> (i32, i32) {
    %c0_i32 = arith.constant 0 : i32
    %c0_i32_0 = arith.constant 0 : i32
    %c0_i32_1 = arith.constant 0 : i32
    return %c0_i32, %c0_i32_0 : i32, i32
  }
  func.func @transform_6(%arg0: i32) -> (i32, i32) {
    %c0_i32 = arith.constant 0 : i32
    %c0_i32_0 = arith.constant 0 : i32
    %c0_i32_1 = arith.constant 0 : i32
    return %c0_i32, %c0_i32_0 : i32, i32
  }
  func.func @transform_7(%arg0: i32) -> (i32, i32) {
    %c0_i32 = arith.constant 0 : i32
    %c0_i32_0 = arith.constant 0 : i32
    return %arg0, %c0_i32 : i32, i32
  }
}

</mosaic_0001>

<bundles_post_ra>
// kernel: tpu_custom_call.1
= control target key start
LH: loop header
LB: loop body
LE: loop exit
PB: predicated region body
PF: predicated region fallthrough
CT: control target
= control target key end

     0   :  { %12 = vsyncpa [#allocation3], 0  ;;  %s600_s0 = inlined_call_operand.hbm [shape: f32[16,128], index: 0, kind: input, shape index: {}]   ;;  %s601_s1 = inlined_call_operand.hbm [shape: f32[128,256], index: 1, kind: input, shape index: {}]   ;;  %s602_s2 = inlined_call_operand.vmem [shape: f32[1,256], index: 2, kind: input, shape index: {}]   ;;  %s603_s3 = inlined_call_operand.hbm [shape: f32[256,128], index: 3, kind: input, shape index: {}]   ;;  %s604_s4 = inlined_call_operand.vmem [shape: f32[1,128], index: 4, kind: input, shape index: {}]   ;;  %s605_s5 = inlined_call_operand.vmem [shape: f32[1,128], index: 5, kind: input, shape index: {}]   ;;  %s606_s6 = inlined_call_operand.vmem [shape: f32[1,128], index: 6, kind: input, shape index: {}]   ;;  %s607_s7 = inlined_call_operand.hbm [shape: f32[16,128], index: 7, kind: output, shape index: {}]  }
   0x1   :  { %13 = vsyncpa [#allocation6], 0 }
   0x2   :  { %14 = vsyncpa [#allocation4], 0  ;;  %s512_s24 = smov [#allocation5]  }
   0x3   :  { %s32_s25 = sshll.u32 %s512_s24, 4  ;;  %s33_s25 = int_to_ptr.vmem [resolvable:$true] %s32_s25 }
   0x4   :  { %s434_s26 = scalar_lea.vmem %s33_s25, 4096  ;;  %p439_p1 = scmp.lt.s32.totalorder %s33_s25, %s33_s25 }
   0x5   :  { %p435_p0 = scmp.ne.s32.totalorder %s33_s25, %s434_s26  ;;  %p440_p2 = scmp.lt.s32.totalorder %s434_s26, %s434_s26 }
   0x7   :  { %p441_p3 = por %p440_p2, %p439_p1 }
   0x9   :  { %p442_p4 = pnand %p441_p3, %p435_p0 }
   0xb   :  { %445 = shalt.err (!%p442_p4)
}
   0xc   :  { %s513_s27 = smov 256   ;;  %s514_s28 = smov 16  }
   0xd   :  { %38 = dma.hbm_to_vmem [thread:$0]  %s601_s1, 4096, %s33_s25, [#allocation6], %s513_s27, %s513_s27, %s514_s28  }
   0xe   :  { %s515_s8 = smov [#allocation2]  }
   0xf   :  { %s20_s9 = sshll.u32 %s515_s8, 4  ;;  %s21_s9 = int_to_ptr.vmem [resolvable:$true] %s20_s9 }
  0x10   :  { %s454_s10 = scalar_lea.vmem %s21_s9, 256  ;;  %p459_p6 = scmp.lt.s32.totalorder %s21_s9, %s21_s9 }
  0x11   :  { %p455_p5 = scmp.ne.s32.totalorder %s21_s9, %s454_s10  ;;  %p460_p7 = scmp.lt.s32.totalorder %s454_s10, %s454_s10 }
  0x13   :  { %p461_p8 = por %p460_p7, %p459_p6 }
  0x15   :  { %p462_p9 = pnand %p461_p8, %p455_p5 }
  0x17   :  { %465 = shalt.err (!%p462_p9)
}
  0x18   :  { %s516_s11 = smov 128   ;;  %s517_s12 = smov 8  }
  0x19   :  { %26 = dma.hbm_to_vmem [thread:$0]  %s600_s0, 256, %s21_s9, [#allocation3], %s516_s11, %s516_s11, %s517_s12  }
  0x1a   :  { %s518_s1 = smov [#allocation7]  }
  0x1b   :  { %s46_s15 = sshll.u32 %s518_s1, 4  ;;  %s47_s15 = int_to_ptr.vmem [resolvable:$true] %s46_s15 }
  0x1c   :  { %s474_s16 = scalar_lea.vmem %s47_s15, 4096  ;;  %p479_p11 = scmp.lt.s32.totalorder %s47_s15, %s47_s15 }
  0x1d   :  { %p475_p10 = scmp.ne.s32.totalorder %s47_s15, %s474_s16  ;;  %p480_p12 = scmp.lt.s32.totalorder %s474_s16, %s474_s16 }
  0x1f   :  { %p481_p13 = por %p480_p12, %p479_p11 }
  0x21   :  { %p482_p0 = pnand %p481_p13, %p475_p10 }
  0x23   :  { %485 = shalt.err (!%p482_p0)
}
  0x24   :  { %52 = dma.hbm_to_vmem [thread:$0]  %s603_s3, 4096, %s47_s15, [#allocation6], %s516_s11, %s516_s11, %s517_s12  }
  0x25   :  { %506 = dma.done.wait [#allocation3], 256  }
  0x26   :  { %507 = vsyncadd [#allocation3], 4294967040 }
  0x27   :  { %508 = dma.done.wait [#allocation6], 8192  }
  0x28   :  { %509 = vsyncadd [#allocation6], 4294959104  ;;  %v519_v0 = vmov 0.0   ;;  %v101_v1 = vld [vmem:[#allocation5 + $0xf8] sm:$0xff]  ;;  %v100_v2 = vld [vmem:[#allocation5 + $0xf0] sm:$0xff]  ;;  %s520_s23 = smov [#allocation8]  }
  0x29   :  { %178 = vmatprep.mubr.f32.mxu0 %v519_v0  ;;  %v99_v3 = vld [vmem:[#allocation5 + $0xe8] sm:$0xff]  ;;  %114 = vmatprep.subr.mxu0 %v101_v1  ;;  %v98_v4 = vld [vmem:[#allocation5 + $0xe0] sm:$0xff]  ;;  %v97_v5 = vld [vmem:[#allocation5 + $0xd8] sm:$0xff]  ;;  %s359_s24 = sshll.u32 %s520_s23, 4  ;;  %s360_s24 = int_to_ptr.vmem [resolvable:$true] %s359_s24 }
  0x2a   :  { %115 = vmatpush1.msra.mxu0 %v100_v2  ;;  %v96_v6 = vld [vmem:[#allocation5 + $0xd0] sm:$0xff]  ;;  %v95_v7 = vld [vmem:[#allocation5 + $0xc8] sm:$0xff]  ;;  %v94_v8 = vld [vmem:[#allocation5 + $0xc0] sm:$0xff]  ;;  %s486_s25 = scalar_lea.vmem %s360_s24, 256  ;;  %p491_p2 = scmp.lt.s32.totalorder %s360_s24, %s360_s24 }
  0x2b   :  { %116 = vmatprep.subr.mxu0 %v99_v3  ;;  %v93_v9 = vld [vmem:[#allocation5 + $0xb8] sm:$0xff]  ;;  %v92_v10 = vld [vmem:[#allocation5 + $0xb0] sm:$0xff]  ;;  %v91_v11 = vld [vmem:[#allocation5 + $0xa8] sm:$0xff]  ;;  %p487_p1 = scmp.ne.s32.totalorder %s360_s24, %s486_s25  ;;  %p492_p3 = scmp.lt.s32.totalorder %s486_s25, %s486_s25 }
  0x2c   :  { %117 = vmatpush1.msra.mxu0 %v98_v4  ;;  %v90_v12 = vld [vmem:[#allocation5 + $0xa0] sm:$0xff]  ;;  %v89_v13 = vld [vmem:[#allocation5 + $0x98] sm:$0xff]  ;;  %v88_v14 = vld [vmem:[#allocation5 + $0x90] sm:$0xff] }
  0x2d   :  { %118 = vmatprep.subr.mxu0 %v97_v5  ;;  %v226_v15 = vld [vmem:[#allocation7 + $0xf8] sm:$0xff]  ;;  %v87_v17 = vld [vmem:[#allocation5 + $0x88] sm:$0xff]  ;;  %v225_v18 = vld [vmem:[#allocation7 + $0xf0] sm:$0xff]  ;;  %p493_p4 = por %p492_p3, %p491_p2 }
  0x2e   :  { %119 = vmatpush1.msra.mxu0 %v96_v6  ;;  %v210_v16 = vld [vmem:[#allocation7 + $0x78] sm:$0xff]  ;;  %375 = vmatprep.subr.mxu1 %v226_v15  ;;  %v209_v19 = vld [vmem:[#allocation7 + $0x70] sm:$0xff]  ;;  %v86_v20 = vld [vmem:[#allocation5 + $0x80] sm:$0xff] }
  0x2f   :  { %120 = vmatprep.subr.mxu0 %v95_v7  ;;  %376 = vmatpush3.msra.mxu1 %v210_v16  ;;  %v224_v21 = vld [vmem:[#allocation7 + $0xe8] sm:$0xff]  ;;  %v85_v22 = vld [vmem:[#allocation5 + $0x78] sm:$0xff]  ;;  %v84_v24 = vld [vmem:[#allocation5 + $0x70] sm:$0xff]  ;;  %p494_p5 = pnand %p493_p4, %p487_p1 }
  0x30   :  { %121 = vmatpush1.msra.mxu0 %v94_v8  ;;  %377 = vmatprep.subr.mxu1 %v225_v18  ;;  %v208_v23 = vld [vmem:[#allocation7 + $0x68] sm:$0xff]  ;;  %v223_v25 = vld [vmem:[#allocation7 + $0xe0] sm:$0xff]  ;;  %v222_v29 = vld [vmem:[#allocation7 + $0xd8] sm:$0xff] }
  0x31   :  { %122 = vmatprep.subr.mxu0 %v93_v9  ;;  %378 = vmatpush3.msra.mxu1 %v209_v19  ;;  %v83_v26 = vld [vmem:[#allocation5 + $0x68] sm:$0xff]  ;;  %v207_v27 = vld [vmem:[#allocation7 + $0x60] sm:$0xff]  ;;  %v81_v30 = vld [vmem:[#allocation5 + $0x58] sm:$0xff] }
  0x32   :  { %123 = vmatpush1.msra.mxu0 %v92_v10  ;;  %379 = vmatprep.subr.mxu1 %v224_v21  ;;  %v82_v28 = vld [vmem:[#allocation5 + $0x60] sm:$0xff]  ;;  %v206_v31 = vld [vmem:[#allocation7 + $0x58] sm:$0xff]  ;;  %v80_v32 = vld [vmem:[#allocation5 + $0x50] sm:$0xff] }
  0x33   :  { %124 = vmatprep.subr.mxu0 %v91_v11  ;;  %380 = vmatpush3.msra.mxu1 %v208_v23  ;;  %v221_v33 = vld [vmem:[#allocation7 + $0xd0] sm:$0xff]  ;;  %v79_v34 = vld [vmem:[#allocation5 + $0x48] sm:$0xff]  ;;  %v78_v36 = vld [vmem:[#allocation5 + $0x40] sm:$0xff] }
  0x34   :  { %125 = vmatpush1.msra.mxu0 %v90_v12  ;;  %381 = vmatprep.subr.mxu1 %v223_v25  ;;  %v205_v35 = vld [vmem:[#allocation7 + $0x50] sm:$0xff]  ;;  %v220_v37 = vld [vmem:[#allocation7 + $0xc8] sm:$0xff]  ;;  %v77_v38 = vld [vmem:[#allocation5 + $0x38] sm:$0xff] }
  0x35   :  { %126 = vmatprep.subr.mxu0 %v89_v13  ;;  %382 = vmatpush3.msra.mxu1 %v207_v27  ;;  %v204_v39 = vld [vmem:[#allocation7 + $0x48] sm:$0xff]  ;;  %v76_v40 = vld [vmem:[#allocation5 + $0x30] sm:$0xff]  ;;  %v219_v41 = vld [vmem:[#allocation7 + $0xc0] sm:$0xff] }
  0x36   :  { %127 = vmatpush1.msra.mxu0 %v88_v14  ;;  %383 = vmatprep.subr.mxu1 %v222_v29  ;;  %v75_v42 = vld [vmem:[#allocation5 + $0x28] sm:$0xff]  ;;  %v203_v43 = vld [vmem:[#allocation7 + $0x40] sm:$0xff]  ;;  %v218_v45 = vld [vmem:[#allocation7 + $0xb8] sm:$0xff] }
  0x37   :  { %128 = vmatprep.subr.mxu0 %v87_v17  ;;  %384 = vmatpush3.msra.mxu1 %v206_v31  ;;  %v74_v44 = vld [vmem:[#allocation5 + $0x20] sm:$0xff]  ;;  %v73_v46 = vld [vmem:[#allocation5 + $0x18] sm:$0xff]  ;;  %v72_v48 = vld [vmem:[#allocation5 + $0x10] sm:$0xff] }
  0x38   :  { %129 = vmatpush1.msra.mxu0 %v86_v20  ;;  %385 = vmatprep.subr.mxu1 %v221_v33  ;;  %v202_v47 = vld [vmem:[#allocation7 + $0x38] sm:$0xff]  ;;  %v217_v49 = vld [vmem:[#allocation7 + $0xb0] sm:$0xff]  ;;  %v71_v50 = vld [vmem:[#allocation5 + $0x8] sm:$0xff] }
  0x39   :  { %130 = vmatprep.subr.mxu0 %v85_v22  ;;  %386 = vmatpush3.msra.mxu1 %v205_v35  ;;  %v201_v51 = vld [vmem:[#allocation7 + $0x30] sm:$0xff]  ;;  %v70_v52 = vld [vmem:[#allocation5] sm:$0xff]  ;;  %v216_v53 = vld [vmem:[#allocation7 + $0xa8] sm:$0xff] }
  0x3a   :  { %131 = vmatpush1.msra.mxu0 %v84_v24  ;;  %387 = vmatprep.subr.mxu1 %v220_v37  ;;  %v577_v54 = vld [vmem:[#allocation2] sm:$0xff]  ;;  %v200_v55 = vld [vmem:[#allocation7 + $0x28] sm:$0xff]  ;;  %v215_v56 = vld [vmem:[#allocation7 + $0xa0] sm:$0xff] }
  0x3b   :  { %132 = vmatprep.subr.mxu0 %v83_v26  ;;  %388 = vmatpush3.msra.mxu1 %v204_v39  ;;  %v199_v57 = vld [vmem:[#allocation7 + $0x20] sm:$0xff]  ;;  %v69_v58 = vld [vmem:[#allocation2 + $0x8] sm:$0xff]  ;;  %v213_v61 = vld [vmem:[#allocation7 + $0x90] sm:$0xff] }
  0x3c   :  { %133 = vmatpush1.msra.mxu0 %v82_v28  ;;  %389 = vmatprep.subr.mxu1 %v219_v41  ;;  %v214_v59 = vld [vmem:[#allocation7 + $0x98] sm:$0xff]  ;;  %v197_v62 = vld [vmem:[#allocation7 + $0x10] sm:$0xff]  ;;  %v212_v63 = vld [vmem:[#allocation7 + $0x88] sm:$0xff] }
  0x3d   :  { %134 = vmatprep.subr.mxu0 %v81_v30  ;;  %390 = vmatpush3.msra.mxu1 %v203_v43  ;;  %v198_v60 = vld [vmem:[#allocation7 + $0x18] sm:$0xff]  ;;  %v196_v1 = vld [vmem:[#allocation7 + $0x8] sm:$0xff]  ;;  %v211_v2 = vld [vmem:[#allocation7 + $0x80] sm:$0xff] }
  0x3e   :  { %135 = vmatpush1.msra.mxu0 %v80_v32  ;;  %391 = vmatprep.subr.mxu1 %v218_v45  ;;  %v195_v3 = vld [vmem:[#allocation7] sm:$0xff]  ;;  %v102_v6 = vld [vmem:[%s602_s2] sm:$0x3] }
  0x3f   :  { %136 = vmatprep.subr.mxu0 %v79_v34  ;;  %392 = vmatpush3.msra.mxu1 %v202_v47  ;;  %v372_v23 = vld [vmem:[%s604_s4] ss:$0 sm:$0xff] }
  0x40   :  { %137 = vmatpush1.msra.mxu0 %v78_v36  ;;  %393 = vmatprep.subr.mxu1 %v217_v49 }
  0x41   :  { %138 = vmatprep.subr.mxu0 %v77_v38  ;;  %394 = vmatpush3.msra.mxu1 %v201_v51 }
  0x42   :  { %139 = vmatpush1.msra.mxu0 %v76_v40  ;;  %395 = vmatprep.subr.mxu1 %v216_v53 }
  0x43   :  { %140 = vmatprep.subr.mxu0 %v75_v42  ;;  %396 = vmatpush3.msra.mxu1 %v200_v55 }
  0x44   :  { %141 = vmatpush1.msra.mxu0 %v74_v44  ;;  %397 = vmatprep.subr.mxu1 %v215_v56 }
  0x45   :  { %142 = vmatprep.subr.mxu0 %v73_v46  ;;  %398 = vmatpush3.msra.mxu1 %v199_v57 }
  0x46   :  { %143 = vmatpush1.msra.mxu0 %v72_v48  ;;  %399 = vmatprep.subr.mxu1 %v214_v59  ;;  %v373_v48 = vld [vmem:[%s605_s5] ss:$0 sm:$0xff] }
  0x47   :  { %144 = vmatprep.subr.mxu0 %v71_v50  ;;  %400 = vmatpush3.msra.mxu1 %v198_v60  ;;  %v374_v50 = vld [vmem:[%s606_s6] ss:$0 sm:$0xff] }
  0x48   :  { %145 = vmatpush1.msra.mxu0 %v70_v52  ;;  %401 = vmatprep.subr.mxu1 %v213_v61 }
  0x49   :  { %179 = vmatmul.mubr.f32.vlgmr.msra.gmra.mxu0 %v577_v54  ;;  %402 = vmatpush3.msra.mxu1 %v197_v62 }
  0x4a   :  { %184 = vmatprep.mubr.f32.mxu0 %v519_v0  ;;  %403 = vmatprep.subr.mxu1 %v212_v63  ;;  %v104_v0 = vlaneseq }
  0x4b   :  { %404 = vmatpush3.msra.mxu1 %v196_v1 }
  0x4c   :  { %405 = vmatprep.subr.mxu1 %v211_v2  ;;  %v105_v4 = vshrl.u32 %v104_v0, 7 }
  0x4d   :  { %185 = vmatmul.mubr.f32.gmra.mxu0 %v69_v58  ;;  %406 = vmatpush3.msra.mxu1 %v195_v3 }
  0x4e   :  { %v106_v5 = vsub.s32 0, %v105_v4  ;;  %v110_v7 = vsub.s32 1, %v105_v4 }
  0x50   :  { %v107_v8 = vrot.slane %v102_v6, %v106_v5  ;;  %v111_v9 = vrot.slane %v102_v6, %v110_v7 }
 0x109   :  { %v180_v10 = vpop.f32.mrf.mxu0 }
 0x10a   :  { %v181_v11 = vadd.f32 %v180_v10, %v107_v8 }
 0x10b   :  { %v182_v12 = vpop.f32.mrf.mxu0 }
 0x10c   :  { %v183_v13 = vadd.f32 %v182_v12, %v111_v9  ;;  %v191_v16 = vmax.f32 %v181_v11, 0.0 }
 0x10d   :  { %v186_v14 = vpop.f32.mrf.mxu0 }
 0x10e   :  { %v192_v15 = vmax.f32 %v183_v13, 0.0  ;;  %v187_v17 = vadd.f32 %v186_v14, %v107_v8 }
 0x10f   :  { %v188_v18 = vpop.f32.mrf.mxu0 }
 0x110   :  { %v189_v19 = vadd.f32 %v188_v18, %v111_v9  ;;  %298 = vmatprep.mubr.f32.mxu1 %v192_v15  ;;  %v193_v21 = vmax.f32 %v187_v17, 0.0 }
 0x111   :  { %299 = vmatmul.mubr.f32.vlgmr.msra.gmra.mxu1 %v191_v16 }
 0x112   :  { %v194_v20 = vmax.f32 %v189_v19, 0.0 }
 0x114   :  { %303 = vmatprep.mubr.f32.mxu1 %v194_v20 }
 0x115   :  { %304 = vmatmul.mubr.f32.gmra.mxu1 %v193_v21 }
 0x1d1   :  { %v407_v22 = vpop.f32.mrf.mxu1 }
 0x1d3   :  { %v408_v24 = vpop.f32.mrf.mxu1 }
 0x1d4   :  { %v409_v25 = vadd.f32 %v408_v24, %v407_v22 }
 0x1d5   :  { %v410_v26 = vpop.f32.mrf.mxu1 }
 0x1d6   :  { %v301_v27 = vadd.f32 %v409_v25, %v372_v23 }
 0x1d7   :  { %v411_v28 = vpop.f32.mrf.mxu1 }
 0x1d8   :  { %v412_v29 = vadd.f32 %v411_v28, %v410_v26  ;;  %v309_v30 = vadd.f32 %v301_v27, %v577_v54 }
 0x1da   :  { %v306_v31 = vadd.f32 %v412_v29, %v372_v23  ;;  %311 = vadd.xlane.f32.xlu0 %v309_v30 }
 0x1dc   :  { %v310_v32 = vadd.f32 %v306_v31, %v69_v58 }
 0x1de   :  { %313 = vadd.xlane.f32.xlu0 %v310_v32 }
 0x263   :  { %v312_v33 = vpop.xlane.xlu0 %311 }
 0x264   :  { %v316_v34 = vmul.f32 0.0078125, %v312_v33 }
 0x266   :  { %v318_v35 = vsub.f32 %v309_v30, %v316_v34 }
 0x267   :  { %v314_v36 = vpop.xlane.xlu0 %313 }
 0x268   :  { %v317_v37 = vmul.f32 0.0078125, %v314_v36  ;;  %v320_v38 = vmul.f32 %v318_v35, %v318_v35 }
 0x26a   :  { %v319_v39 = vsub.f32 %v310_v32, %v317_v37  ;;  %322 = vadd.xlane.f32.xlu1 %v320_v38 }
 0x26c   :  { %v321_v40 = vmul.f32 %v319_v39, %v319_v39 }
 0x26e   :  { %324 = vadd.xlane.f32.xlu1 %v321_v40 }
 0x2f3   :  { %v323_v41 = vpop.xlane.xlu1 %322 }
 0x2f4   :  { %v326_v42 = vmul.f32 0.0078125, %v323_v41 }
 0x2f6   :  { %v328_v43 = vadd.f32 1e-05, %v326_v42 }
 0x2f7   :  { %v325_v44 = vpop.xlane.xlu1 %324 }
 0x2f8   :  { %422 = vrsqrt.f32 %v328_v43  ;;  %v327_v45 = vmul.f32 0.0078125, %v325_v44 }
 0x2fa   :  { %v329_v46 = vadd.f32 1e-05, %v327_v45 }
 0x2fc   :  { %424 = vrsqrt.f32 %v329_v46 }
 0x305   :  { %v423_v47 = vpop.eup %422 }
 0x306   :  { %v332_v49 = vmul.f32 %v423_v47, %v318_v35 }
 0x308   :  { %v341_v51 = vmul.f32 %v373_v48, %v332_v49 }
 0x309   :  { %v425_v52 = vpop.eup %424 }
 0x30a   :  { %v333_v53 = vmul.f32 %v425_v52, %v319_v39  ;;  %v350_v54 = vadd.f32 %v374_v50, %v341_v51 }
 0x30c   :  { %v342_v55 = vmul.f32 %v373_v48, %v333_v53  ;;  %352 = vst [vmem:[#allocation8] sm:$0xff] %v350_v54 }
 0x30e   :  { %v351_v56 = vadd.f32 %v374_v50, %v342_v55 }
 0x310   :  { %353 = vst [vmem:[#allocation8 + $0x8] sm:$0xff] %v351_v56 }
 0x311   :  { %497 = shalt.err (!%p494_p5)
}
 0x312   :  { %365 = dma.vmem_to_hbm [thread:$0]  %s360_s24, 256, %s607_s7, [#allocation4], %s516_s11, %s516_s11, %s517_s12  }
 0x313   :  { %510 = dma.done.wait [#allocation4], 256  }
 0x314   :  { %511 = vsyncadd [#allocation4], 4294967040 }
 0x315   :  { %369 = vsyncpa [#allocation3], 1 }
 0x316   :  { %370 = vsyncpa [#allocation6], 1 }
 0x317   :  { %371 = vsyncpa [#allocation4], 1 }

</bundles_post_ra>
